<compile_context>
chip_gen: v6e
topology: v6e:2x2x1
jax: 0.10.0
libtpu: 0.0.40
codegen_flags: <defaults>
</compile_context>

<pallas_src>
import functools

import jax
import jax.numpy as jnp
from jax import lax
from jax.experimental import pallas as pl
from jax.experimental.pallas import tpu as pltpu

EPS = 1e-5
NEG_SLOPE = 0.01          # nn.LeakyReLU default
LANE = 128                # TPU lane width


def _vmem_limit_bytes():
    """Generation-aware scoped-VMEM limit (~3/4 of physical per-core VMEM)."""
    try:
        physical = pltpu.get_tpu_info().vmem_capacity_bytes
    except Exception:
        physical = 64 * 1024 * 1024   # conservative fallback (v7x per-TC VMEM)
    return int(physical * 3 // 4)


def _mlp_kernel(x_ref, w1_ref, w2_ref, w3_ref, wo_ref, vec_ref, out_ref, *,
                hidden, out_pad):
    """Whole-batch fused MLP: 3x (Linear + BatchNorm1d + LeakyReLU) + Linear.

    vec_ref rows: 0,1 = (g1, be1), 2,3 = (g2, be2), 4,5 = (g3, be3),
                  6 = bo (zero-padded to out_pad lanes).
    """
    H = hidden
    inv_b = 1.0 / x_ref.shape[0]
    vecs = vec_ref[...]                       # single (7, P) f32 load

    def fc_bn_act(h_bf16, w_ref, row):
        g = vecs[row, :H]
        be = vecs[row + 1, :H]
        # Linear on the MXU: bf16 inputs, f32 accumulation.  The Linear bias is
        # intentionally omitted: BatchNorm's mean subtraction cancels it exactly.
        z = jnp.dot(h_bf16, w_ref[...], preferred_element_type=jnp.float32)
        # BatchNorm1d (training-mode batch stats), single pass over z:
        # sum and sum-of-squares -> fused scale/shift.  mean ~ 0 (no bias), so
        # the E[z^2]-E[z]^2 form is well conditioned here.
        # TODO(synk): at very large batch tiles, compute s1/s2 via
        #             ones(1,B) @ [z | z*z] on the MXU to offload the XLU.
        s1 = jnp.sum(z, axis=0, keepdims=True)
        s2 = jnp.sum(z * z, axis=0, keepdims=True)
        mean = s1 * inv_b
        var = s2 * inv_b - mean * mean        # biased variance
        scale = g * lax.rsqrt(var + EPS)
        shift = be - mean * scale
        z = z * scale + shift
        # LeakyReLU without cmp+select.
        z = jnp.maximum(z, NEG_SLOPE * z)
        # Next layer's MXU input dtype.
        return z.astype(jnp.bfloat16)

    h = fc_bn_act(x_ref[...], w1_ref, 0)
    h = fc_bn_act(h, w2_ref, 2)
    h = fc_bn_act(h, w3_ref, 4)

    bo = vecs[6, :out_pad]
    out_ref[...] = (jnp.dot(h, wo_ref[...], preferred_element_type=jnp.float32)
                    + bo)


def pack_params(params):
    """Pack raw params: bf16 weights, lane-dense padded wo/bo, stacked vectors."""
    (w1, b1, g1, be1, w2, b2, g2, be2, w3, b3, g3, be3, wo, bo) = params
    del b1, b2, b3                     # cancelled exactly by BatchNorm's mean
    hidden = w1.shape[1]
    out_size = wo.shape[1]
    out_pad = ((out_size + LANE - 1) // LANE) * LANE
    P = max(hidden, out_pad)

    def pad_row(v):
        v = v.reshape(-1).astype(jnp.float32)
        return jnp.pad(v, (0, P - v.shape[0]))

    vec_pack = jnp.stack(
        [pad_row(v) for v in (g1, be1, g2, be2, g3, be3, bo)], axis=0)
    wo_pad = jnp.pad(wo, ((0, 0), (0, out_pad - out_size)))

    to_bf16 = lambda w: w.astype(jnp.bfloat16)
    packed = (to_bf16(w1), to_bf16(w2), to_bf16(w3), to_bf16(wo_pad), vec_pack)
    return packed, hidden, out_pad, out_size


def net_forward(x, packed, hidden, out_pad, out_size):
    """x: (B, input_size) float32. packed: output of pack_params."""
    w1, w2, w3, wo_pad, vec_pack = packed
    B, in_size = x.shape
    x_bf = x.astype(jnp.bfloat16)      # halves the input DMA as well

    vmem_limit = _vmem_limit_bytes()

    # Residency estimate for the whole-batch-resident design.  A grid-less
    # pallas_call does not double-buffer, so no 2x pipelining factor.
    weight_bytes = 2 * (w1.size + w2.size + w3.size + wo_pad.size)   # bf16
    vec_bytes = 4 * vec_pack.size
    io_bytes = 2 * x_bf.size + 4 * B * out_pad
    act_bytes = 6 * B * hidden * 4     # z(f32) + live h + elementwise temps
    est_bytes = weight_bytes + vec_bytes + io_bytes + act_bytes
    assert est_bytes < vmem_limit, (
        f"batch too large for whole-batch-resident kernel "
        f"({est_bytes} B > {vmem_limit} B); use a batch-tiled grid with "
        f"two-phase BN instead")

    flops = (2 * B * (in_size * hidden + 2 * hidden * hidden + hidden * out_pad)
             + 12 * B * hidden)                       # matmuls + BN/activation
    cost = pl.CostEstimate(
        flops=flops,
        transcendentals=3 * hidden,                   # rsqrt per BN feature
        bytes_accessed=weight_bytes + vec_bytes + io_bytes)

    vmem = pl.BlockSpec(memory_space=pltpu.MemorySpace.VMEM)
    kernel = functools.partial(_mlp_kernel, hidden=hidden, out_pad=out_pad)

    out_full = pl.pallas_call(
        kernel,
        out_shape=jax.ShapeDtypeStruct((B, out_pad), jnp.float32),
        in_specs=[vmem] * 6,
        out_specs=vmem,
        compiler_params=pltpu.CompilerParams(vmem_limit_bytes=vmem_limit),
        cost_estimate=cost,
    )(x_bf, w1, w2, w3, wo_pad, vec_pack)

    # Drop the lane padding outside the kernel.
    return out_full[:, :out_size]


def init_params(key, input_size, hidden_size, out_size):
    """Deterministic synthetic parameters (weights pre-transposed to (in, out))."""
    ks = jax.random.split(key, 8)

    def linear(kw, kb, fan_in, fan_out):
        bound = 1.0 / jnp.sqrt(fan_in)
        w = jax.random.uniform(kw, (fan_in, fan_out), jnp.float32, -bound, bound)
        b = jax.random.uniform(kb, (1, fan_out), jnp.float32, -bound, bound)
        return w, b

    w1, b1 = linear(ks[0], ks[1], input_size, hidden_size)
    w2, b2 = linear(ks[2], ks[3], hidden_size, hidden_size)
    w3, b3 = linear(ks[4], ks[5], hidden_size, hidden_size)
    wo, bo = linear(ks[6], ks[7], hidden_size, out_size)

    # BatchNorm1d affine params (perturbed so the affine path is exercised).
    def bn(i):
        g = jnp.ones((1, hidden_size), jnp.float32) + 0.01 * (i + 1)
        be = jnp.full((1, hidden_size), 0.1 * (i + 1), jnp.float32)
        return g, be

    g1, be1 = bn(0)
    g2, be2 = bn(1)
    g3, be3 = bn(2)

    return (w1, b1, g1, be1,
            w2, b2, g2, be2,
            w3, b3, g3, be3,
            wo, bo)


def net_forward_ref_matched(x, params):
    """Pure-JAX reference with the SAME numerics as the kernel
    (bf16 MXU inputs, f32 accumulation, bias-free BN layers, fused scale/shift)."""
    (w1, _b1, g1, be1, w2, _b2, g2, be2, w3, _b3, g3, be3, wo, bo) = params

    def fc_bn_act(h, w, g, be):
        z = jnp.dot(h.astype(jnp.bfloat16), w.astype(jnp.bfloat16),
                    preferred_element_type=jnp.float32)
        mean = jnp.mean(z, axis=0, keepdims=True)
        var = jnp.mean(z * z, axis=0, keepdims=True) - mean * mean
        scale = g * lax.rsqrt(var + EPS)
        shift = be - mean * scale
        z = z * scale + shift
        return jnp.maximum(z, NEG_SLOPE * z)

    h = fc_bn_act(x, w1, g1, be1)
    h = fc_bn_act(h, w2, g2, be2)
    h = fc_bn_act(h, w3, g3, be3)
    return jnp.dot(h.astype(jnp.bfloat16), wo.astype(jnp.bfloat16),
                   preferred_element_type=jnp.float32) + bo


def net_forward_ref_f32(x, params):
    """Exact f32 reference of the torch module's forward (with Linear biases)."""
    (w1, b1, g1, be1, w2, b2, g2, be2, w3, b3, g3, be3, wo, bo) = params

    def fc_bn_act(h, w, b, g, be):
        z = h @ w + b
        mean = jnp.mean(z, axis=0, keepdims=True)
        var = jnp.mean((z - mean) ** 2, axis=0, keepdims=True)
        z = (z - mean) / jnp.sqrt(var + EPS) * g + be
        return jnp.where(z > 0, z, NEG_SLOPE * z)

    h = fc_bn_act(x, w1, b1, g1, be1)
    h = fc_bn_act(h, w2, b2, g2, be2)
    h = fc_bn_act(h, w3, b3, g3, be3)
    return h @ wo + bo


if __name__ == "__main__":
    # Small test shapes consistent with the module (real model: hidden=1024,
    # fingerprint-sized input).  B=128 so each matmul feeds at least a full
    # sublane block of MXU rows; real use should batch B >= 128 (v5e) / 256
    # (v6e/v7x) rows per call.
    B, INPUT_SIZE, HIDDEN_SIZE, OUT_SIZE = 128, 64, 128, 8

    key = jax.random.PRNGKey(0)
    kx, kp = jax.random.split(key)
    x = jax.random.normal(kx, (B, INPUT_SIZE), jnp.float32)
    params = init_params(kp, INPUT_SIZE, HIDDEN_SIZE, OUT_SIZE)

    packed, hidden, out_pad, out_size = pack_params(params)
    out = jax.block_until_ready(net_forward(x, packed, hidden, out_pad, out_size))

    ref_matched = net_forward_ref_matched(x, params)
    ref_f32 = net_forward_ref_f32(x, params)

    assert out.shape == (B, OUT_SIZE)
    # Tight check against a reference with identical numerics (bf16 MXU inputs).
    assert jnp.allclose(out, ref_matched, atol=2e-3, rtol=2e-3)
    # Loose sanity check against exact f32 module semantics (slack accounts for
    # bf16 matmul rounding amplified through 3 BN-normalized layers).
    assert jnp.allclose(out, ref_f32, atol=0.2, rtol=0.2)
    print("KERNEL_OK")
</pallas_src>

<mosaic_0001>
module attributes {stable_mosaic.version = 11 : i64} {
  func.func @_mlp_kernel(%arg0: memref<128x64xbf16, #tpu.memory_space<vmem>>, %arg1: memref<64x128xbf16, #tpu.memory_space<vmem>>, %arg2: memref<128x128xbf16, #tpu.memory_space<vmem>>, %arg3: memref<128x128xbf16, #tpu.memory_space<vmem>>, %arg4: memref<128x128xbf16, #tpu.memory_space<vmem>>, %arg5: memref<7x128xf32, #tpu.memory_space<vmem>>, %arg6: memref<128x128xf32, #tpu.memory_space<vmem>>) attributes {dimension_semantics = [], scalar_prefetch = 0 : i64, scratch_operands = 0 : i64, tpu.core_type = #tpu.core_type<tc>} {
    %c0 = arith.constant 0 : index
    %c0_0 = arith.constant 0 : index
    %0 = vector.load %arg5[%c0, %c0_0] : memref<7x128xf32, #tpu.memory_space<vmem>>, vector<7x128xf32>
    %c0_1 = arith.constant 0 : index
    %c0_2 = arith.constant 0 : index
    %1 = vector.load %arg0[%c0_1, %c0_2] : memref<128x64xbf16, #tpu.memory_space<vmem>>, vector<128x64xbf16>
    %2 = vector.extract_strided_slice %0 {offsets = [0, 0], sizes = [1, 128], strides = [1, 1]} : vector<7x128xf32> to vector<1x128xf32>
    %3 = vector.shape_cast %2 : vector<1x128xf32> to vector<128xf32>
    %4 = vector.extract_strided_slice %0 {offsets = [1, 0], sizes = [1, 128], strides = [1, 1]} : vector<7x128xf32> to vector<1x128xf32>
    %5 = vector.shape_cast %4 : vector<1x128xf32> to vector<128xf32>
    %c0_3 = arith.constant 0 : index
    %c0_4 = arith.constant 0 : index
    %6 = vector.load %arg1[%c0_3, %c0_4] : memref<64x128xbf16, #tpu.memory_space<vmem>>, vector<64x128xbf16>
    %cst = arith.constant dense<0.000000e+00> : vector<128x128xf32>
    %7 = tpu.matmul %1, %6, %cst {dimension_numbers = #tpu.dot_dimension_numbers<[1], [0], [0], [1], [0, 0, 1, 1], [], []>} : vector<128x64xbf16>, vector<64x128xbf16>, vector<128x128xf32> -> vector<128x128xf32>
    %cst_5 = arith.constant dense<0.000000e+00> : vector<128xf32>
    %8 = vector.multi_reduction <add>, %7, %cst_5 [0] : vector<128x128xf32> to vector<128xf32>
    %9 = vector.shape_cast %8 : vector<128xf32> to vector<1x128xf32>
    %10 = arith.mulf %7, %7 : vector<128x128xf32>
    %cst_6 = arith.constant dense<0.000000e+00> : vector<128xf32>
    %11 = vector.multi_reduction <add>, %10, %cst_6 [0] : vector<128x128xf32> to vector<128xf32>
    %12 = vector.shape_cast %11 : vector<128xf32> to vector<1x128xf32>
    %cst_7 = arith.constant 7.812500e-03 : f32
    %13 = vector.broadcast %cst_7 : f32 to vector<1x128xf32>
    %14 = arith.mulf %9, %13 : vector<1x128xf32>
    %cst_8 = arith.constant 7.812500e-03 : f32
    %15 = vector.broadcast %cst_8 : f32 to vector<1x128xf32>
    %16 = arith.mulf %12, %15 : vector<1x128xf32>
    %17 = arith.mulf %14, %14 : vector<1x128xf32>
    %18 = arith.subf %16, %17 : vector<1x128xf32>
    %cst_9 = arith.constant 9.99999974E-6 : f32
    %19 = vector.broadcast %cst_9 : f32 to vector<1x128xf32>
    %20 = arith.addf %18, %19 : vector<1x128xf32>
    %21 = math.rsqrt %20 : vector<1x128xf32>
    %22 = vector.shape_cast %3 : vector<128xf32> to vector<1x128xf32>
    %23 = arith.mulf %22, %21 : vector<1x128xf32>
    %24 = arith.mulf %14, %23 : vector<1x128xf32>
    %25 = vector.shape_cast %5 : vector<128xf32> to vector<1x128xf32>
    %26 = arith.subf %25, %24 : vector<1x128xf32>
    %27 = vector.broadcast %23 : vector<1x128xf32> to vector<128x128xf32>
    %28 = arith.mulf %7, %27 : vector<128x128xf32>
    %29 = vector.broadcast %26 : vector<1x128xf32> to vector<128x128xf32>
    %30 = arith.addf %28, %29 : vector<128x128xf32>
    %cst_10 = arith.constant 0.00999999977 : f32
    %31 = vector.broadcast %cst_10 : f32 to vector<128x128xf32>
    %32 = arith.mulf %31, %30 : vector<128x128xf32>
    %33 = arith.maximumf %30, %32 : vector<128x128xf32>
    %34 = arith.truncf %33 : vector<128x128xf32> to vector<128x128xbf16>
    %35 = vector.extract_strided_slice %0 {offsets = [2, 0], sizes = [1, 128], strides = [1, 1]} : vector<7x128xf32> to vector<1x128xf32>
    %36 = vector.shape_cast %35 : vector<1x128xf32> to vector<128xf32>
    %37 = vector.extract_strided_slice %0 {offsets = [3, 0], sizes = [1, 128], strides = [1, 1]} : vector<7x128xf32> to vector<1x128xf32>
    %38 = vector.shape_cast %37 : vector<1x128xf32> to vector<128xf32>
    %c0_11 = arith.constant 0 : index
    %c0_12 = arith.constant 0 : index
    %39 = vector.load %arg2[%c0_11, %c0_12] : memref<128x128xbf16, #tpu.memory_space<vmem>>, vector<128x128xbf16>
    %cst_13 = arith.constant dense<0.000000e+00> : vector<128x128xf32>
    %40 = tpu.matmul %34, %39, %cst_13 {dimension_numbers = #tpu.dot_dimension_numbers<[1], [0], [0], [1], [0, 0, 1, 1], [], []>} : vector<128x128xbf16>, vector<128x128xbf16>, vector<128x128xf32> -> vector<128x128xf32>
    %cst_14 = arith.constant dense<0.000000e+00> : vector<128xf32>
    %41 = vector.multi_reduction <add>, %40, %cst_14 [0] : vector<128x128xf32> to vector<128xf32>
    %42 = vector.shape_cast %41 : vector<128xf32> to vector<1x128xf32>
    %43 = arith.mulf %40, %40 : vector<128x128xf32>
    %cst_15 = arith.constant dense<0.000000e+00> : vector<128xf32>
    %44 = vector.multi_reduction <add>, %43, %cst_15 [0] : vector<128x128xf32> to vector<128xf32>
    %45 = vector.shape_cast %44 : vector<128xf32> to vector<1x128xf32>
    %cst_16 = arith.constant 7.812500e-03 : f32
    %46 = vector.broadcast %cst_16 : f32 to vector<1x128xf32>
    %47 = arith.mulf %42, %46 : vector<1x128xf32>
    %cst_17 = arith.constant 7.812500e-03 : f32
    %48 = vector.broadcast %cst_17 : f32 to vector<1x128xf32>
    %49 = arith.mulf %45, %48 : vector<1x128xf32>
    %50 = arith.mulf %47, %47 : vector<1x128xf32>
    %51 = arith.subf %49, %50 : vector<1x128xf32>
    %cst_18 = arith.constant 9.99999974E-6 : f32
    %52 = vector.broadcast %cst_18 : f32 to vector<1x128xf32>
    %53 = arith.addf %51, %52 : vector<1x128xf32>
    %54 = math.rsqrt %53 : vector<1x128xf32>
    %55 = vector.shape_cast %36 : vector<128xf32> to vector<1x128xf32>
    %56 = arith.mulf %55, %54 : vector<1x128xf32>
    %57 = arith.mulf %47, %56 : vector<1x128xf32>
    %58 = vector.shape_cast %38 : vector<128xf32> to vector<1x128xf32>
    %59 = arith.subf %58, %57 : vector<1x128xf32>
    %60 = vector.broadcast %56 : vector<1x128xf32> to vector<128x128xf32>
    %61 = arith.mulf %40, %60 : vector<128x128xf32>
    %62 = vector.broadcast %59 : vector<1x128xf32> to vector<128x128xf32>
    %63 = arith.addf %61, %62 : vector<128x128xf32>
    %cst_19 = arith.constant 0.00999999977 : f32
    %64 = vector.broadcast %cst_19 : f32 to vector<128x128xf32>
    %65 = arith.mulf %64, %63 : vector<128x128xf32>
    %66 = arith.maximumf %63, %65 : vector<128x128xf32>
    %67 = arith.truncf %66 : vector<128x128xf32> to vector<128x128xbf16>
    %68 = vector.extract_strided_slice %0 {offsets = [4, 0], sizes = [1, 128], strides = [1, 1]} : vector<7x128xf32> to vector<1x128xf32>
    %69 = vector.shape_cast %68 : vector<1x128xf32> to vector<128xf32>
    %70 = vector.extract_strided_slice %0 {offsets = [5, 0], sizes = [1, 128], strides = [1, 1]} : vector<7x128xf32> to vector<1x128xf32>
    %71 = vector.shape_cast %70 : vector<1x128xf32> to vector<128xf32>
    %c0_20 = arith.constant 0 : index
    %c0_21 = arith.constant 0 : index
    %72 = vector.load %arg3[%c0_20, %c0_21] : memref<128x128xbf16, #tpu.memory_space<vmem>>, vector<128x128xbf16>
    %cst_22 = arith.constant dense<0.000000e+00> : vector<128x128xf32>
    %73 = tpu.matmul %67, %72, %cst_22 {dimension_numbers = #tpu.dot_dimension_numbers<[1], [0], [0], [1], [0, 0, 1, 1], [], []>} : vector<128x128xbf16>, vector<128x128xbf16>, vector<128x128xf32> -> vector<128x128xf32>
    %cst_23 = arith.constant dense<0.000000e+00> : vector<128xf32>
    %74 = vector.multi_reduction <add>, %73, %cst_23 [0] : vector<128x128xf32> to vector<128xf32>
    %75 = vector.shape_cast %74 : vector<128xf32> to vector<1x128xf32>
    %76 = arith.mulf %73, %73 : vector<128x128xf32>
    %cst_24 = arith.constant dense<0.000000e+00> : vector<128xf32>
    %77 = vector.multi_reduction <add>, %76, %cst_24 [0] : vector<128x128xf32> to vector<128xf32>
    %78 = vector.shape_cast %77 : vector<128xf32> to vector<1x128xf32>
    %cst_25 = arith.constant 7.812500e-03 : f32
    %79 = vector.broadcast %cst_25 : f32 to vector<1x128xf32>
    %80 = arith.mulf %75, %79 : vector<1x128xf32>
    %cst_26 = arith.constant 7.812500e-03 : f32
    %81 = vector.broadcast %cst_26 : f32 to vector<1x128xf32>
    %82 = arith.mulf %78, %81 : vector<1x128xf32>
    %83 = arith.mulf %80, %80 : vector<1x128xf32>
    %84 = arith.subf %82, %83 : vector<1x128xf32>
    %cst_27 = arith.constant 9.99999974E-6 : f32
    %85 = vector.broadcast %cst_27 : f32 to vector<1x128xf32>
    %86 = arith.addf %84, %85 : vector<1x128xf32>
    %87 = math.rsqrt %86 : vector<1x128xf32>
    %88 = vector.shape_cast %69 : vector<128xf32> to vector<1x128xf32>
    %89 = arith.mulf %88, %87 : vector<1x128xf32>
    %90 = arith.mulf %80, %89 : vector<1x128xf32>
    %91 = vector.shape_cast %71 : vector<128xf32> to vector<1x128xf32>
    %92 = arith.subf %91, %90 : vector<1x128xf32>
    %93 = vector.broadcast %89 : vector<1x128xf32> to vector<128x128xf32>
    %94 = arith.mulf %73, %93 : vector<128x128xf32>
    %95 = vector.broadcast %92 : vector<1x128xf32> to vector<128x128xf32>
    %96 = arith.addf %94, %95 : vector<128x128xf32>
    %cst_28 = arith.constant 0.00999999977 : f32
    %97 = vector.broadcast %cst_28 : f32 to vector<128x128xf32>
    %98 = arith.mulf %97, %96 : vector<128x128xf32>
    %99 = arith.maximumf %96, %98 : vector<128x128xf32>
    %100 = arith.truncf %99 : vector<128x128xf32> to vector<128x128xbf16>
    %101 = vector.extract_strided_slice %0 {offsets = [6, 0], sizes = [1, 128], strides = [1, 1]} : vector<7x128xf32> to vector<1x128xf32>
    %102 = vector.shape_cast %101 : vector<1x128xf32> to vector<128xf32>
    %c0_29 = arith.constant 0 : index
    %c0_30 = arith.constant 0 : index
    %103 = vector.load %arg4[%c0_29, %c0_30] : memref<128x128xbf16, #tpu.memory_space<vmem>>, vector<128x128xbf16>
    %cst_31 = arith.constant dense<0.000000e+00> : vector<128x128xf32>
    %104 = tpu.matmul %100, %103, %cst_31 {dimension_numbers = #tpu.dot_dimension_numbers<[1], [0], [0], [1], [0, 0, 1, 1], [], []>} : vector<128x128xbf16>, vector<128x128xbf16>, vector<128x128xf32> -> vector<128x128xf32>
    %105 = vector.shape_cast %102 : vector<128xf32> to vector<1x128xf32>
    %106 = vector.broadcast %105 : vector<1x128xf32> to vector<128x128xf32>
    %107 = arith.addf %104, %106 : vector<128x128xf32>
    %c0_32 = arith.constant 0 : index
    %c0_33 = arith.constant 0 : index
    %108 = vector.load %arg6[%c0_32, %c0_33] : memref<128x128xf32, #tpu.memory_space<vmem>>, vector<128x128xf32>
    tpu.vector_store %arg6[%c0_32, %c0_33], %107 {strides = array<i32>} : memref<128x128xf32, #tpu.memory_space<vmem>>, vector<128x128xf32>,
    return
  }
}

</mosaic_0001>

<bundles_post_ra>
// kernel: tpu_custom_call.1
= control target key start
LH: loop header
LB: loop body
LE: loop exit
PB: predicated region body
PF: predicated region fallthrough
CT: control target
= control target key end

     0   :  { %11 = vsyncpa [#allocation3], 0  ;;  %s1988_s0 = inlined_call_operand.vmem [shape: bf16[128,64], index: 0, kind: input, shape index: {}]   ;;  %s1989_s1 = inlined_call_operand.vmem [shape: bf16[64,128], index: 1, kind: input, shape index: {}]   ;;  %s1990_s2 = inlined_call_operand.vmem [shape: bf16[128,128], index: 2, kind: input, shape index: {}]   ;;  %s1991_s3 = inlined_call_operand.hbm [shape: bf16[128,128], index: 3, kind: input, shape index: {}]   ;;  %s1992_s4 = inlined_call_operand.hbm [shape: bf16[128,128], index: 4, kind: input, shape index: {}]   ;;  %s1993_s5 = inlined_call_operand.vmem [shape: f32[7,128], index: 5, kind: input, shape index: {}]   ;;  %s1994_s6 = inlined_call_operand.hbm [shape: f32[128,128], index: 6, kind: output, shape index: {}]  }
   0x1   :  { %12 = vsyncpa [#allocation6], 0 }
   0x2   :  { %13 = vsyncpa [#allocation4], 0  ;;  %s1590_s21 = smov [#allocation2]  }
   0x3   :  { %s25_s22 = sshll.u32 %s1590_s21, 4  ;;  %s26_s22 = int_to_ptr.vmem [resolvable:$true] %s25_s22 }
   0x4   :  { %s1532_s23 = scalar_lea.vmem %s26_s22, 1024  ;;  %p1537_p1 = scmp.lt.s32.totalorder %s26_s22, %s26_s22 }
   0x5   :  { %p1533_p0 = scmp.ne.s32.totalorder %s26_s22, %s1532_s23  ;;  %p1538_p2 = scmp.lt.s32.totalorder %s1532_s23, %s1532_s23 }
   0x7   :  { %p1539_p3 = por %p1538_p2, %p1537_p1 }
   0x9   :  { %p1540_p4 = pnand %p1539_p3, %p1533_p0 }
   0xb   :  { %1543 = shalt.err (!%p1540_p4)
}
   0xc   :  { %s1591_s24 = smov 64   ;;  %s1592_s25 = smov 4  }
   0xd   :  { %31 = dma.hbm_to_vmem [thread:$0]  %s1991_s3, 1024, %s26_s22, [#allocation3], %s1591_s24, %s1591_s24, %s1592_s25  }
   0xe   :  { %s1593_s28 = smov [#allocation5]  }
   0xf   :  { %s37_s29 = sshll.u32 %s1593_s28, 4  ;;  %s38_s29 = int_to_ptr.vmem [resolvable:$true] %s37_s29 }
  0x10   :  { %s1552_s30 = scalar_lea.vmem %s38_s29, 1024  ;;  %p1557_p6 = scmp.lt.s32.totalorder %s38_s29, %s38_s29 }
  0x11   :  { %p1553_p5 = scmp.ne.s32.totalorder %s38_s29, %s1552_s30  ;;  %p1558_p7 = scmp.lt.s32.totalorder %s1552_s30, %s1552_s30 }
  0x13   :  { %p1559_p8 = por %p1558_p7, %p1557_p6 }
  0x15   :  { %p1560_p9 = pnand %p1559_p8, %p1553_p5 }
  0x17   :  { %1563 = shalt.err (!%p1560_p9)
}
  0x18   :  { %43 = dma.hbm_to_vmem [thread:$0]  %s1992_s4, 1024, %s38_s29, [#allocation6], %s1591_s24, %s1591_s24, %s1592_s25  }
  0x19   :  { %1584 = dma.done.wait [#allocation3], 1024  }
  0x1a   :  { %1585 = vsyncadd [#allocation3], 4294966272 }
  0x1b   :  { %1586 = dma.done.wait [#allocation6], 1024  }
  0x1c   :  { %1587 = vsyncadd [#allocation6], 4294966272  ;;  %v1482_v0 = vld [vmem:[%s1989_s1 + $0x18] sm:$0xff]   ;;  %v1483_v1 = vld [vmem:[%s1989_s1 + $0x10] sm:$0xff]   ;;  %vm142_vm0 = vcmask 523264  }
  0x1d   :  { %1339 = vmatprep.subr.bf16.mxu0 %v1482_v0  ;;  %v1484_v2 = vld [vmem:[%s1989_s1 + $0x8] sm:$0xff]   ;;  %v1486_v3 = vld [vmem:[%s1988_s0] sm:$0xff]   ;;  %v1488_v6 = vld [vmem:[%s1988_s0 + $0x10] sm:$0xff]  }
  0x1e   :  { %1340 = vmatpush3.bf16.msra.mxu0 %v1482_v0  ;;  %1347 = vmatprep.mubr.msk.bf16.mxu0 %vm142_vm0, %v1486_v3  ;;  %v1485_v4 = vld [vmem:[%s1989_s1] sm:$0xff]   ;;  %v1487_v5 = vld [vmem:[%s1988_s0 + $0x8] sm:$0xff]   ;;  %v1489_v7 = vld [vmem:[%s1988_s0 + $0x18] sm:$0xff]  }
  0x1f   :  { %1341 = vmatprep.subr.bf16.mxu0 %v1483_v1  ;;  %v1490_v8 = vld [vmem:[%s1988_s0 + $0x20] sm:$0xff]   ;;  %v1491_v9 = vld [vmem:[%s1988_s0 + $0x28] sm:$0xff]   ;;  %v1492_v10 = vld [vmem:[%s1988_s0 + $0x30] sm:$0xff]  }
  0x20   :  { %v1493_v11 = vld [vmem:[%s1988_s0 + $0x38] sm:$0xff]   ;;  %v1495_v13 = vld [vmem:[%s1990_s2 + $0x30] sm:$0xff]   ;;  %v1496_v14 = vld [vmem:[%s1990_s2 + $0x28] sm:$0xff]  }
  0x21   :  { %v1494_v12 = vld [vmem:[%s1990_s2 + $0x38] sm:$0xff]   ;;  %v1497_v15 = vld [vmem:[%s1990_s2 + $0x20] sm:$0xff]   ;;  %v1499_v17 = vld [vmem:[%s1990_s2 + $0x10] sm:$0xff]  }
  0x22   :  { %1342 = vmatpush3.bf16.msra.mxu0 %v1483_v1  ;;  %1363 = vmatprep.subr.bf16.mxu1 %v1494_v12  ;;  %v1498_v16 = vld [vmem:[%s1990_s2 + $0x18] sm:$0xff]   ;;  %v1500_v18 = vld [vmem:[%s1990_s2 + $0x8] sm:$0xff]   ;;  %v1501_v19 = vld [vmem:[%s1990_s2] sm:$0xff]  }
  0x23   :  { %1343 = vmatprep.subr.bf16.mxu0 %v1484_v2  ;;  %1364 = vmatpush3.bf16.msra.mxu1 %v1494_v12 }
  0x24   :  { %1365 = vmatprep.subr.bf16.mxu1 %v1495_v13 }
  0x26   :  { %1344 = vmatpush3.bf16.msra.mxu0 %v1484_v2 }
  0x27   :  { %1345 = vmatprep.subr.bf16.mxu0 %v1485_v4  ;;  %1366 = vmatpush3.bf16.msra.mxu1 %v1495_v13 }
  0x28   :  { %1367 = vmatprep.subr.bf16.mxu1 %v1496_v14 }
  0x2a   :  { %1346 = vmatpush3.bf16.msra.mxu0 %v1485_v4 }
  0x2b   :  { %1368 = vmatpush3.bf16.msra.mxu1 %v1496_v14 }
  0x2c   :  { %1369 = vmatprep.subr.bf16.mxu1 %v1497_v15 }
  0x2d   :  { %1348 = vmatmul.mubr.msk.bf16.vlgmr.msra.gmra.mxu0 %vm142_vm0, %v1487_v5 }
  0x2e   :  { %1351 = vmatprep.mubr.msk.bf16.mxu0 %vm142_vm0, %v1488_v6 }
  0x2f   :  { %1370 = vmatpush3.bf16.msra.mxu1 %v1497_v15 }
  0x30   :  { %1371 = vmatprep.subr.bf16.mxu1 %v1498_v16 }
  0x33   :  { %1372 = vmatpush3.bf16.msra.mxu1 %v1498_v16 }
  0x34   :  { %1373 = vmatprep.subr.bf16.mxu1 %v1499_v17 }
  0x35   :  { %1352 = vmatmul.mubr.msk.bf16.gmra.mxu0 %vm142_vm0, %v1489_v7 }
  0x36   :  { %1355 = vmatprep.mubr.msk.bf16.mxu0 %vm142_vm0, %v1490_v8 }
  0x37   :  { %1374 = vmatpush3.bf16.msra.mxu1 %v1499_v17 }
  0x38   :  { %1375 = vmatprep.subr.bf16.mxu1 %v1500_v18 }
  0x3b   :  { %1376 = vmatpush3.bf16.msra.mxu1 %v1500_v18 }
  0x3c   :  { %1377 = vmatprep.subr.bf16.mxu1 %v1501_v19 }
  0x3d   :  { %1356 = vmatmul.mubr.msk.bf16.gmra.mxu0 %vm142_vm0, %v1491_v9 }
  0x3e   :  { %1359 = vmatprep.mubr.msk.bf16.mxu0 %vm142_vm0, %v1492_v10 }
  0x3f   :  { %1378 = vmatpush3.bf16.msra.mxu1 %v1501_v19 }
  0x45   :  { %1360 = vmatmul.mubr.msk.bf16.gmra.mxu0 %vm142_vm0, %v1493_v11 }
  0xed   :  { %v1706_v20 = vpop.f32.mrf.mxu0 }
  0xee   :  { %v287_v28 = vmul.f32 %v1706_v20, %v1706_v20 }
  0xef   :  { %v1708_v21 = vpop.f32.mrf.mxu0 }
  0xf0   :  { %v285_v24 = vmul.f32 %v1708_v21, %v1708_v21 }
  0xf1   :  { %v1710_v22 = vpop.f32.mrf.mxu0 }
  0xf2   :  { %v288_v32 = vmul.f32 %v1710_v22, %v1710_v22 }
  0xf3   :  { %v1712_v23 = vpop.f32.mrf.mxu0 }
  0xf4   :  { %v264_v25 = vadd.f32 %v1712_v23, %v1708_v21  ;;  %v286_v26 = vmul.f32 %v1712_v23, %v1712_v23 }
  0xf5   :  { %v1720_v27 = vpop.f32.mrf.mxu0 }
  0xf6   :  { %v265_v29 = vadd.f32 %v1706_v20, %v264_v25  ;;  %v301_v30 = vadd.f32 %v286_v26, %v285_v24  ;;  %v291_v44 = vmul.f32 %v1720_v27, %v1720_v27 }
  0xf7   :  { %v1725_v31 = vpop.f32.mrf.mxu0 }
  0xf8   :  { %v302_v33 = vadd.f32 %v301_v30, %v287_v28  ;;  %v266_v34 = vadd.f32 %v1710_v22, %v265_v29  ;;  %v289_v37 = vmul.f32 %v1725_v31, %v1725_v31 }
  0xf9   :  { %v1730_v35 = vpop.f32.mrf.mxu0 }
  0xfa   :  { %v267_v36 = vadd.f32 %v266_v34, %v1725_v31  ;;  %v303_v38 = vadd.f32 %v302_v33, %v288_v32  ;;  %v292_v48 = vmul.f32 %v1730_v35, %v1730_v35 }
  0xfb   :  { %v1735_v39 = vpop.f32.mrf.mxu0 }
  0xfc   :  { %v304_v40 = vadd.f32 %v303_v38, %v289_v37  ;;  %v268_v41 = vadd.f32 %v267_v36, %v1735_v39  ;;  %v290_v42 = vmul.f32 %v1735_v39, %v1735_v39 }
  0xfd   :  { %v1740_v43 = vpop.f32.mrf.mxu0 }
  0xfe   :  { %v269_v45 = vadd.f32 %v1720_v27, %v268_v41  ;;  %v305_v46 = vadd.f32 %v304_v40, %v290_v42  ;;  %v295_v60 = vmul.f32 %v1740_v43, %v1740_v43 }
  0xff   :  { %v1745_v47 = vpop.f32.mrf.mxu0 }
 0x100   :  { %v306_v49 = vadd.f32 %v305_v46, %v291_v44  ;;  %v270_v50 = vadd.f32 %v1730_v35, %v269_v45  ;;  %v293_v53 = vmul.f32 %v1745_v47, %v1745_v47  ;;  %v334_v44 = vlaneseq  ;;  %v1786_v46 = vld [vmem:[%s1993_s5] sm:$0x7f]  ;;  %s1594_s5 = smov [#allocation7]  }
 0x101   :  { %v1750_v51 = vpop.f32.mrf.mxu0  ;;  %s1222_s20 = sshll.u32 %s1594_s5, 4  ;;  %s1223_s20 = int_to_ptr.vmem [resolvable:$true] %s1222_s20 }
 0x102   :  { %v271_v52 = vadd.f32 %v270_v50, %v1745_v47  ;;  %v307_v54 = vadd.f32 %v306_v49, %v292_v48  ;;  %v296_v0 = vmul.f32 %v1750_v51, %v1750_v51  ;;  %v1781_v45 = vshrl.u32 %v334_v44, 7  ;;  %s1564_s21 = scalar_lea.vmem %s1223_s20, 2048  ;;  %p1569_p11 = scmp.lt.s32.totalorder %s1223_s20, %s1223_s20 }
 0x103   :  { %v1755_v55 = vpop.f32.mrf.mxu0  ;;  %p1565_p10 = scmp.ne.s32.totalorder %s1223_s20, %s1564_s21  ;;  %p1570_p12 = scmp.lt.s32.totalorder %s1564_s21, %s1564_s21 }
 0x104   :  { %v308_v56 = vadd.f32 %v307_v54, %v293_v53  ;;  %v272_v57 = vadd.f32 %v271_v52, %v1755_v55  ;;  %v294_v58 = vmul.f32 %v1755_v55, %v1755_v55  ;;  %v336_v49 = vsub.s32 0, %v1781_v45 }
 0x105   :  { %v1760_v59 = vpop.f32.mrf.mxu0  ;;  %p1571_p13 = por %p1570_p12, %p1569_p11 }
 0x106   :  { %v273_v61 = vadd.f32 %v1740_v43, %v272_v57  ;;  %v309_v62 = vadd.f32 %v308_v56, %v294_v58  ;;  %v299_v11 = vmul.f32 %v1760_v59, %v1760_v59  ;;  %v356_v56 = vsub.s32 1, %v1781_v45 }
 0x107   :  { %v1765_v63 = vpop.f32.mrf.mxu0  ;;  %p1572_p0 = pnand %p1571_p13, %p1565_p10 }
 0x108   :  { %v310_v1 = vadd.f32 %v309_v62, %v295_v60  ;;  %v274_v2 = vadd.f32 %v1750_v51, %v273_v61  ;;  %v297_v5 = vmul.f32 %v1765_v63, %v1765_v63 }
 0x109   :  { %v1770_v3 = vpop.f32.mrf.mxu0 }
 0x10a   :  { %v275_v4 = vadd.f32 %v274_v2, %v1765_v63  ;;  %v311_v6 = vadd.f32 %v310_v1, %v296_v0  ;;  %v300_v14 = vmul.f32 %v1770_v3, %v1770_v3 }
 0x10b   :  { %v252_v7 = vpop.f32.mrf.mxu0 }
 0x10c   :  { %v312_v8 = vadd.f32 %v311_v6, %v297_v5  ;;  %v276_v9 = vadd.f32 %v275_v4, %v252_v7  ;;  %v298_v10 = vmul.f32 %v252_v7, %v252_v7 }
 0x10e   :  { %v277_v12 = vadd.f32 %v1760_v59, %v276_v9  ;;  %v313_v13 = vadd.f32 %v312_v8, %v298_v10 }
 0x110   :  { %v278_v15 = vadd.f32 %v1770_v3, %v277_v12  ;;  %v314_v16 = vadd.f32 %v313_v13, %v299_v11 }
 0x112   :  { %v279_v17 = vrot.slane %v278_v15, 4  ;;  %v315_v18 = vadd.f32 %v314_v16, %v300_v14 }
 0x114   :  { %v280_v19 = vadd.f32 %v279_v17, %v278_v15  ;;  %v316_v24 = vrot.slane %v315_v18, 4 }
 0x116   :  { %v281_v25 = vrot.slane %v280_v19, 2  ;;  %v317_v26 = vadd.f32 %v316_v24, %v315_v18 }
 0x118   :  { %v282_v28 = vadd.f32 %v281_v25, %v280_v19  ;;  %v318_v29 = vrot.slane %v317_v26, 2 }
 0x11a   :  { %v283_v30 = vrot.slane %v282_v28, 1  ;;  %v319_v32 = vadd.f32 %v318_v29, %v317_v26 }
 0x11c   :  { %v284_v33 = vadd.f32 %v283_v30, %v282_v28  ;;  %v320_v34 = vrot.slane %v319_v32, 1 }
 0x11e   :  { %v321_v36 = vadd.f32 %v320_v34, %v319_v32  ;;  %v322_v37 = vmul.f32 0.0078125, %v284_v33 }
 0x120   :  { %v323_v38 = vmul.f32 0.0078125, %v321_v36  ;;  %v324_v40 = vmul.f32 %v322_v37, %v322_v37 }
 0x122   :  { %v325_v41 = vsub.f32 %v323_v38, %v324_v40 }
 0x124   :  { %v326_v42 = vadd.f32 1e-05, %v325_v41 }
 0x126   :  { %1518 = vrsqrt.f32 %v326_v42 }
 0x133   :  { %v1519_v48 = vpop.eup %1518 }
 0x134   :  { %v328_v50 = vmul.f32 %v1519_v48, %v1786_v46 }
 0x136   :  { %v329_v52 = vmul.f32 %v328_v50, %v322_v37  ;;  %v337_v53 = vrot.slane %v328_v50, %v336_v49 }
 0x138   :  { %v331_v54 = vrot.slane %v329_v52, 7  ;;  %v351_v58 = vmul.f32 %v337_v53, %v252_v7  ;;  %v338_v60 = vmul.f32 %v337_v53, %v1708_v21  ;;  %v339_v62 = vmul.f32 %v337_v53, %v1712_v23 }
 0x139   :  { %v340_v0 = vmul.f32 %v1706_v20, %v337_v53  ;;  %v341_v1 = vmul.f32 %v1710_v22, %v337_v53  ;;  %v342_v2 = vmul.f32 %v337_v53, %v1725_v31  ;;  %v343_v4 = vmul.f32 %v337_v53, %v1735_v39 }
 0x13a   :  { %v333_v57 = vsub.f32 %v1786_v46, %v331_v54  ;;  %v344_v5 = vmul.f32 %v1720_v27, %v337_v53  ;;  %v345_v6 = vmul.f32 %v1730_v35, %v337_v53  ;;  %v346_v21 = vmul.f32 %v337_v53, %v1745_v47 }
 0x13b   :  { %v347_v20 = vmul.f32 %v337_v53, %v1755_v55  ;;  %v348_v18 = vmul.f32 %v1740_v43, %v337_v53  ;;  %v349_v25 = vmul.f32 %v1750_v51, %v337_v53  ;;  %v352_v40 = vmul.f32 %v1760_v59, %v337_v53 }
 0x13c   :  { %v357_v61 = vrot.slane %v333_v57, %v356_v56  ;;  %v350_v42 = vmul.f32 %v337_v53, %v1765_v63  ;;  %v353_v51 = vmul.f32 %v1770_v3, %v337_v53 }
 0x13e   :  { %v358_v8 = vadd.f32 %v357_v61, %v338_v60  ;;  %v359_v9 = vadd.f32 %v357_v61, %v339_v62  ;;  %v360_v7 = vadd.f32 %v357_v61, %v340_v0  ;;  %v361_v10 = vadd.f32 %v357_v61, %v341_v1 }
 0x13f   :  { %v362_v11 = vadd.f32 %v357_v61, %v342_v2  ;;  %v363_v23 = vadd.f32 %v357_v61, %v343_v4  ;;  %v364_v13 = vadd.f32 %v357_v61, %v344_v5  ;;  %v365_v31 = vadd.f32 %v357_v61, %v345_v6 }
 0x140   :  { %v374_v12 = vmul.f32 0.01, %v358_v8  ;;  %v375_v22 = vmul.f32 0.01, %v359_v9  ;;  %v376_v14 = vmul.f32 0.01, %v360_v7  ;;  %v366_v27 = vadd.f32 %v357_v61, %v346_v21 }
 0x141   :  { %v377_v39 = vmul.f32 0.01, %v361_v10  ;;  %v378_v15 = vmul.f32 0.01, %v362_v11  ;;  %v379_v17 = vmul.f32 0.01, %v363_v23  ;;  %v367_v29 = vadd.f32 %v357_v61, %v347_v20 }
 0x142   :  { %v390_v16 = vmax.f32 %v358_v8, %v374_v12  ;;  %v391_v35 = vmax.f32 %v359_v9, %v375_v22  ;;  %v392_v19 = vmax.f32 %v360_v7, %v376_v14  ;;  %v380_v28 = vmul.f32 0.01, %v364_v13  ;;  %v1502_v7 = vld [vmem:[#allocation2 + $0x38] sm:$0xff]   ;;  %v1504_v21 = vld [vmem:[#allocation2 + $0x28] sm:$0xff]   ;;  %v1509_v12 = vld [vmem:[#allocation2] sm:$0xff]  }
 0x143   :  { %v393_v47 = vmax.f32 %v361_v10, %v377_v39  ;;  %v394_v24 = vmax.f32 %v362_v11, %v378_v15  ;;  %v395_v55 = vmax.f32 %v363_v23, %v379_v17  ;;  %v381_v32 = vmul.f32 0.01, %v365_v31  ;;  %1395 = vmatprep.subr.bf16.mxu0 %v1502_v7  ;;  %v1505_v10 = vld [vmem:[#allocation2 + $0x20] sm:$0xff]   ;;  %v1506_v11 = vld [vmem:[#allocation2 + $0x18] sm:$0xff]   ;;  %v1507_v23 = vld [vmem:[#allocation2 + $0x10] sm:$0xff]  }
 0x144   :  { %v406_v26 = vpack.c.bf16 %v391_v35, %v390_v16  ;;  %v382_v33 = vmul.f32 0.01, %v366_v27  ;;  %v368_v34 = vadd.f32 %v357_v61, %v348_v18  ;;  %v383_v37 = vmul.f32 0.01, %v367_v29  ;;  %1396 = vmatpush3.bf16.msra.mxu0 %v1502_v7  ;;  %v1508_v20 = vld [vmem:[#allocation2 + $0x8] sm:$0xff]  }
 0x145   :  { %v407_v30 = vpack.c.bf16 %v393_v47, %v392_v19  ;;  %v408_v36 = vpack.c.bf16 %v395_v55, %v394_v24  ;;  %v369_v38 = vadd.f32 %v357_v61, %v349_v25  ;;  %v371_v44 = vadd.f32 %v357_v61, %v351_v58 }
 0x146   :  { %1379 = vmatprep.mubr.bf16.mxu1 %v406_v26  ;;  %v398_v43 = vmax.f32 %v366_v27, %v382_v33  ;;  %v384_v41 = vmul.f32 0.01, %v368_v34  ;;  %v399_v48 = vmax.f32 %v367_v29, %v383_v37  ;;  %v372_v50 = vadd.f32 %v357_v61, %v352_v40 }
 0x147   :  { %1380 = vmatmul.mubr.bf16.vlgmr.msra.gmra.mxu1 %v407_v30  ;;  %v385_v49 = vmul.f32 0.01, %v369_v38  ;;  %v396_v52 = vmax.f32 %v364_v13, %v380_v28  ;;  %v397_v54 = vmax.f32 %v365_v31, %v381_v32  ;;  %v373_v57 = vadd.f32 %v357_v61, %v353_v51 }
 0x148   :  { %1383 = vmatprep.mubr.bf16.mxu1 %v408_v36  ;;  %v400_v56 = vmax.f32 %v368_v34, %v384_v41  ;;  %v410_v60 = vpack.c.bf16 %v399_v48, %v398_v43  ;;  %v370_v0 = vadd.f32 %v357_v61, %v350_v42  ;;  %v388_v59 = vmul.f32 0.01, %v372_v50  ;;  %v1503_v61 = vld [vmem:[#allocation2 + $0x30] sm:$0xff]  }
 0x149   :  { %v401_v62 = vmax.f32 %v369_v38, %v385_v49  ;;  %v389_v1 = vmul.f32 0.01, %v373_v57  ;;  %v409_v5 = vpack.c.bf16 %v397_v54, %v396_v52  ;;  %v387_v6 = vmul.f32 0.01, %v371_v44  ;;  %1397 = vmatprep.subr.bf16.mxu0 %v1503_v61 }
 0x14a   :  { %v404_v4 = vmax.f32 %v372_v50, %v388_v59  ;;  %v386_v3 = vmul.f32 0.01, %v370_v0  ;;  %1398 = vmatpush3.bf16.msra.mxu0 %v1503_v61 }
 0x14b   :  { %v411_v2 = vpack.c.bf16 %v401_v62, %v400_v56  ;;  %v405_v63 = vmax.f32 %v373_v57, %v389_v1  ;;  %v403_v8 = vmax.f32 %v371_v44, %v387_v6  ;;  %1399 = vmatprep.subr.bf16.mxu0 %v1504_v21 }
 0x14c   :  { %v402_v58 = vmax.f32 %v370_v0, %v386_v3 }
 0x14d   :  { %v413_v53 = vpack.c.bf16 %v405_v63, %v404_v4 }
 0x14e   :  { %v412_v9 = vpack.c.bf16 %v403_v8, %v402_v58  ;;  %1400 = vmatpush3.bf16.msra.mxu0 %v1504_v21 }
 0x14f   :  { %1384 = vmatmul.mubr.bf16.gmra.mxu1 %v409_v5  ;;  %1401 = vmatprep.subr.bf16.mxu0 %v1505_v10 }
 0x150   :  { %1387 = vmatprep.mubr.bf16.mxu1 %v410_v60 }
 0x152   :  { %1402 = vmatpush3.bf16.msra.mxu0 %v1505_v10 }
 0x153   :  { %1403 = vmatprep.subr.bf16.mxu0 %v1506_v11 }
 0x156   :  { %1404 = vmatpush3.bf16.msra.mxu0 %v1506_v11 }
 0x157   :  { %1388 = vmatmul.mubr.bf16.gmra.mxu1 %v411_v2  ;;  %1405 = vmatprep.subr.bf16.mxu0 %v1507_v23 }
 0x158   :  { %1391 = vmatprep.mubr.bf16.mxu1 %v412_v9 }
 0x15a   :  { %1406 = vmatpush3.bf16.msra.mxu0 %v1507_v23 }
 0x15b   :  { %1407 = vmatprep.subr.bf16.mxu0 %v1508_v20 }
 0x15e   :  { %1408 = vmatpush3.bf16.msra.mxu0 %v1508_v20 }
 0x15f   :  { %1392 = vmatmul.mubr.bf16.gmra.mxu1 %v413_v53  ;;  %1409 = vmatprep.subr.bf16.mxu0 %v1509_v12 }
 0x162   :  { %1410 = vmatpush3.bf16.msra.mxu0 %v1509_v12 }
 0x207   :  { %v1807_v22 = vpop.f32.mrf.mxu1 }
 0x208   :  { %v598_v35 = vmul.f32 %v1807_v22, %v1807_v22 }
 0x209   :  { %v1809_v13 = vpop.f32.mrf.mxu1 }
 0x20a   :  { %v596_v39 = vmul.f32 %v1809_v13, %v1809_v13 }
 0x20b   :  { %v1811_v31 = vpop.f32.mrf.mxu1 }
 0x20c   :  { %v599_v47 = vmul.f32 %v1811_v31, %v1811_v31 }
 0x20d   :  { %v1813_v14 = vpop.f32.mrf.mxu1 }
 0x20e   :  { %v575_v15 = vadd.f32 %v1813_v14, %v1809_v13  ;;  %v597_v27 = vmul.f32 %v1813_v14, %v1813_v14 }
 0x20f   :  { %v1821_v16 = vpop.f32.mrf.mxu1 }
 0x210   :  { %v576_v17 = vadd.f32 %v1807_v22, %v575_v15  ;;  %v612_v18 = vadd.f32 %v597_v27, %v596_v39  ;;  %v602_v37 = vmul.f32 %v1821_v16, %v1821_v16 }
 0x211   :  { %v1826_v19 = vpop.f32.mrf.mxu1 }
 0x212   :  { %v613_v24 = vadd.f32 %v612_v18, %v598_v35  ;;  %v577_v25 = vadd.f32 %v1811_v31, %v576_v17  ;;  %v600_v28 = vmul.f32 %v1826_v19, %v1826_v19 }
 0x213   :  { %v1831_v26 = vpop.f32.mrf.mxu1 }
 0x214   :  { %v578_v55 = vadd.f32 %v577_v25, %v1826_v19  ;;  %v614_v29 = vadd.f32 %v613_v24, %v599_v47  ;;  %v603_v41 = vmul.f32 %v1831_v26, %v1831_v26 }
 0x215   :  { %v1836_v30 = vpop.f32.mrf.mxu1 }
 0x216   :  { %v615_v32 = vadd.f32 %v614_v29, %v600_v28  ;;  %v579_v33 = vadd.f32 %v578_v55, %v1836_v30  ;;  %v601_v34 = vmul.f32 %v1836_v30, %v1836_v30 }
 0x217   :  { %v1841_v36 = vpop.f32.mrf.mxu1 }
 0x218   :  { %v580_v38 = vadd.f32 %v1821_v16, %v579_v33  ;;  %v616_v40 = vadd.f32 %v615_v32, %v601_v34  ;;  %v606_v62 = vmul.f32 %v1841_v36, %v1841_v36 }
 0x219   :  { %v1846_v43 = vpop.f32.mrf.mxu1 }
 0x21a   :  { %v617_v42 = vadd.f32 %v616_v40, %v602_v37  ;;  %v581_v51 = vadd.f32 %v1831_v26, %v580_v38  ;;  %v604_v49 = vmul.f32 %v1846_v43, %v1846_v43 }
 0x21b   :  { %v1851_v44 = vpop.f32.mrf.mxu1 }
 0x21c   :  { %v582_v48 = vadd.f32 %v581_v51, %v1846_v43  ;;  %v618_v50 = vadd.f32 %v617_v42, %v603_v41  ;;  %v607_v2 = vmul.f32 %v1851_v44, %v1851_v44  ;;  %v647_v41 = vsub.s32 2, %v1781_v45 }
 0x21d   :  { %v1856_v52 = vpop.f32.mrf.mxu1 }
 0x21e   :  { %v619_v54 = vadd.f32 %v618_v50, %v604_v49  ;;  %v583_v56 = vadd.f32 %v582_v48, %v1856_v52  ;;  %v605_v57 = vmul.f32 %v1856_v52, %v1856_v52  ;;  %v667_v50 = vsub.s32 3, %v1781_v45 }
 0x21f   :  { %v1861_v60 = vpop.f32.mrf.mxu1 }
 0x220   :  { %v584_v0 = vadd.f32 %v1841_v36, %v583_v56  ;;  %v620_v59 = vadd.f32 %v619_v54, %v605_v57  ;;  %v610_v61 = vmul.f32 %v1861_v60, %v1861_v60 }
 0x221   :  { %v1866_v1 = vpop.f32.mrf.mxu1 }
 0x222   :  { %v621_v4 = vadd.f32 %v620_v59, %v606_v62  ;;  %v585_v5 = vadd.f32 %v1851_v44, %v584_v0  ;;  %v608_v3 = vmul.f32 %v1866_v1, %v1866_v1 }
 0x223   :  { %v1871_v63 = vpop.f32.mrf.mxu1 }
 0x224   :  { %v586_v6 = vadd.f32 %v585_v5, %v1866_v1  ;;  %v622_v53 = vadd.f32 %v621_v4, %v607_v2  ;;  %v611_v11 = vmul.f32 %v1871_v63, %v1871_v63 }
 0x225   :  { %v563_v58 = vpop.f32.mrf.mxu1 }
 0x226   :  { %v623_v8 = vadd.f32 %v622_v53, %v608_v3  ;;  %v587_v9 = vadd.f32 %v586_v6, %v563_v58  ;;  %v609_v7 = vmul.f32 %v563_v58, %v563_v58 }
 0x228   :  { %v588_v21 = vadd.f32 %v1861_v60, %v587_v9  ;;  %v624_v10 = vadd.f32 %v623_v8, %v609_v7 }
 0x22a   :  { %v589_v23 = vadd.f32 %v1871_v63, %v588_v21  ;;  %v625_v20 = vadd.f32 %v624_v10, %v610_v61 }
 0x22c   :  { %v590_v12 = vrot.slane %v589_v23, 4  ;;  %v626_v39 = vadd.f32 %v625_v20, %v611_v11 }
 0x22e   :  { %v591_v15 = vadd.f32 %v590_v12, %v589_v23  ;;  %v627_v27 = vrot.slane %v626_v39, 4 }
 0x230   :  { %v592_v35 = vrot.slane %v591_v15, 2  ;;  %v628_v17 = vadd.f32 %v627_v27, %v626_v39 }
 0x232   :  { %v593_v18 = vadd.f32 %v592_v35, %v591_v15  ;;  %v629_v47 = vrot.slane %v628_v17, 2 }
 0x234   :  { %v594_v24 = vrot.slane %v593_v18, 1  ;;  %v630_v25 = vadd.f32 %v629_v47, %v628_v17 }
 0x236   :  { %v595_v55 = vadd.f32 %v594_v24, %v593_v18  ;;  %v631_v28 = vrot.slane %v630_v25, 1 }
 0x238   :  { %v632_v29 = vadd.f32 %v631_v28, %v630_v25  ;;  %v633_v32 = vmul.f32 0.0078125, %v595_v55 }
 0x23a   :  { %v634_v33 = vmul.f32 0.0078125, %v632_v29  ;;  %v635_v34 = vmul.f32 %v633_v32, %v633_v32 }
 0x23c   :  { %v636_v37 = vsub.f32 %v634_v33, %v635_v34 }
 0x23e   :  { %v637_v38 = vadd.f32 1e-05, %v636_v37 }
 0x240   :  { %1520 = vrsqrt.f32 %v637_v38 }
 0x24d   :  { %v1521_v40 = vpop.eup %1520 }
 0x24e   :  { %v639_v42 = vmul.f32 %v1521_v40, %v1786_v46 }
 0x250   :  { %v640_v51 = vmul.f32 %v639_v42, %v633_v32  ;;  %v648_v48 = vrot.slane %v639_v42, %v647_v41 }
 0x252   :  { %v642_v49 = vrot.slane %v640_v51, 7  ;;  %v662_v56 = vmul.f32 %v648_v48, %v563_v58  ;;  %v649_v57 = vmul.f32 %v648_v48, %v1809_v13  ;;  %v650_v0 = vmul.f32 %v648_v48, %v1813_v14 }
 0x253   :  { %v651_v59 = vmul.f32 %v1807_v22, %v648_v48  ;;  %v652_v2 = vmul.f32 %v1811_v31, %v648_v48  ;;  %v653_v4 = vmul.f32 %v648_v48, %v1826_v19  ;;  %v654_v5 = vmul.f32 %v648_v48, %v1836_v30 }
 0x254   :  { %v644_v54 = vsub.f32 %v1786_v46, %v642_v49  ;;  %v655_v6 = vmul.f32 %v1821_v16, %v648_v48  ;;  %v656_v3 = vmul.f32 %v1831_v26, %v648_v48  ;;  %v657_v13 = vmul.f32 %v648_v48, %v1846_v43 }
 0x255   :  { %v658_v22 = vmul.f32 %v648_v48, %v1856_v52  ;;  %v659_v12 = vmul.f32 %v1841_v36, %v648_v48  ;;  %v660_v27 = vmul.f32 %v1851_v44, %v648_v48  ;;  %v663_v33 = vmul.f32 %v1861_v60, %v648_v48 }
 0x256   :  { %v668_v62 = vrot.slane %v644_v54, %v667_v50  ;;  %v661_v37 = vmul.f32 %v648_v48, %v1866_v1  ;;  %v664_v44 = vmul.f32 %v1871_v63, %v648_v48 }
 0x258   :  { %v669_v53 = vadd.f32 %v668_v62, %v649_v57  ;;  %v670_v8 = vadd.f32 %v668_v62, %v650_v0  ;;  %v671_v58 = vadd.f32 %v668_v62, %v651_v59  ;;  %v672_v9 = vadd.f32 %v668_v62, %v652_v2 }
 0x259   :  { %v673_v7 = vadd.f32 %v668_v62, %v653_v4  ;;  %v674_v14 = vadd.f32 %v668_v62, %v654_v5  ;;  %v675_v21 = vadd.f32 %v668_v62, %v655_v6  ;;  %v676_v19 = vadd.f32 %v668_v62, %v656_v3 }
 0x25a   :  { %v685_v61 = vmul.f32 0.01, %v669_v53  ;;  %v686_v31 = vmul.f32 0.01, %v670_v8  ;;  %v687_v10 = vmul.f32 0.01, %v671_v58  ;;  %v677_v16 = vadd.f32 %v668_v62, %v657_v13 }
 0x25b   :  { %v688_v30 = vmul.f32 0.01, %v672_v9  ;;  %v689_v11 = vmul.f32 0.01, %v673_v7  ;;  %v690_v20 = vmul.f32 0.01, %v674_v14  ;;  %v678_v18 = vadd.f32 %v668_v62, %v658_v22 }
 0x25c   :  { %v701_v23 = vmax.f32 %v669_v53, %v685_v61  ;;  %v702_v26 = vmax.f32 %v670_v8, %v686_v31  ;;  %v703_v39 = vmax.f32 %v671_v58, %v687_v10  ;;  %v691_v17 = vmul.f32 0.01, %v675_v21  ;;  %v1510_v58 = vld [vmem:[#allocation5 + $0x38] sm:$0xff]   ;;  %v1512_v13 = vld [vmem:[#allocation5 + $0x28] sm:$0xff]   ;;  %v1517_v61 = vld [vmem:[#allocation5] sm:$0xff]  }
 0x25d   :  { %v704_v43 = vmax.f32 %v672_v9, %v688_v30  ;;  %v705_v15 = vmax.f32 %v673_v7, %v689_v11  ;;  %v706_v52 = vmax.f32 %v674_v14, %v690_v20  ;;  %v692_v24 = vmul.f32 0.01, %v676_v19  ;;  %1459 = vmatprep.subr.bf16.mxu1 %v1510_v58  ;;  %1427 = vmatprep.subr.bf16.mxu0 %v1510_v58  ;;  %v1513_v9 = vld [vmem:[#allocation5 + $0x20] sm:$0xff]   ;;  %v1514_v7 = vld [vmem:[#allocation5 + $0x18] sm:$0xff]   ;;  %v1515_v14 = vld [vmem:[#allocation5 + $0x10] sm:$0xff]  }
 0x25e   :  { %v717_v35 = vpack.c.bf16 %v702_v26, %v701_v23  ;;  %v693_v25 = vmul.f32 0.01, %v677_v16  ;;  %v679_v55 = vadd.f32 %v668_v62, %v659_v12  ;;  %v694_v29 = vmul.f32 0.01, %v678_v18  ;;  %1467 = vmatpush3.bf16.msra.mxu1 %v1510_v58  ;;  %v1516_v22 = vld [vmem:[#allocation5 + $0x8] sm:$0xff]  }
 0x25f   :  { %v718_v47 = vpack.c.bf16 %v704_v43, %v703_v39  ;;  %v719_v28 = vpack.c.bf16 %v706_v52, %v705_v15  ;;  %v680_v32 = vadd.f32 %v668_v62, %v660_v27  ;;  %v682_v38 = vadd.f32 %v668_v62, %v662_v56 }
 0x260   :  { %1411 = vmatprep.mubr.bf16.mxu0 %v717_v35  ;;  %v709_v36 = vmax.f32 %v677_v16, %v693_v25  ;;  %v695_v34 = vmul.f32 0.01, %v679_v55  ;;  %v710_v40 = vmax.f32 %v678_v18, %v694_v29  ;;  %v683_v42 = vadd.f32 %v668_v62, %v663_v33 }
 0x261   :  { %1412 = vmatmul.mubr.bf16.vlgmr.msra.gmra.mxu0 %v718_v47  ;;  %v696_v41 = vmul.f32 0.01, %v680_v32  ;;  %v707_v51 = vmax.f32 %v675_v21, %v691_v17  ;;  %v708_v49 = vmax.f32 %v676_v19, %v692_v24  ;;  %v684_v54 = vadd.f32 %v668_v62, %v664_v44 }
 0x262   :  { %1415 = vmatprep.mubr.bf16.mxu0 %v719_v28  ;;  %v711_v50 = vmax.f32 %v679_v55, %v695_v34  ;;  %v721_v57 = vpack.c.bf16 %v710_v40, %v709_v36  ;;  %v681_v59 = vadd.f32 %v668_v62, %v661_v37  ;;  %v699_v60 = vmul.f32 0.01, %v683_v42  ;;  %1428 = vmatpush3.bf16.msra.mxu0 %v1510_v58  ;;  %v1511_v62 = vld [vmem:[#allocation5 + $0x30] sm:$0xff]  }
 0x263   :  { %v712_v0 = vmax.f32 %v680_v32, %v696_v41  ;;  %v700_v2 = vmul.f32 0.01, %v684_v54  ;;  %v720_v6 = vpack.c.bf16 %v708_v49, %v707_v51  ;;  %v698_v3 = vmul.f32 0.01, %v682_v38  ;;  %1460 = vmatprep.subr.bf16.mxu1 %v1511_v62  ;;  %1429 = vmatprep.subr.bf16.mxu0 %v1511_v62 }
 0x264   :  { %v715_v5 = vmax.f32 %v683_v42, %v699_v60  ;;  %v697_v63 = vmul.f32 0.01, %v681_v59  ;;  %1468 = vmatpush3.bf16.msra.mxu1 %v1511_v62 }
 0x265   :  { %v722_v4 = vpack.c.bf16 %v712_v0, %v711_v50  ;;  %v716_v1 = vmax.f32 %v684_v54, %v700_v2  ;;  %v714_v53 = vmax.f32 %v682_v38, %v698_v3  ;;  %1461 = vmatprep.subr.bf16.mxu1 %v1512_v13 }
 0x266   :  { %v713_v56 = vmax.f32 %v681_v59, %v697_v63  ;;  %1430 = vmatpush3.bf16.msra.mxu0 %v1511_v62 }
 0x267   :  { %v724_v48 = vpack.c.bf16 %v716_v1, %v715_v5  ;;  %1431 = vmatprep.subr.bf16.mxu0 %v1512_v13 }
 0x268   :  { %v723_v8 = vpack.c.bf16 %v714_v53, %v713_v56  ;;  %1469 = vmatpush3.bf16.msra.mxu1 %v1512_v13 }
 0x269   :  { %1416 = vmatmul.mubr.bf16.gmra.mxu0 %v720_v6  ;;  %1462 = vmatprep.subr.bf16.mxu1 %v1513_v9 }
 0x26a   :  { %1419 = vmatprep.mubr.bf16.mxu0 %v721_v57  ;;  %1432 = vmatpush3.bf16.msra.mxu0 %v1512_v13 }
 0x26b   :  { %1433 = vmatprep.subr.bf16.mxu0 %v1513_v9 }
 0x26c   :  { %1470 = vmatpush3.bf16.msra.mxu1 %v1513_v9 }
 0x26d   :  { %1463 = vmatprep.subr.bf16.mxu1 %v1514_v7 }
 0x26e   :  { %1434 = vmatpush3.bf16.msra.mxu0 %v1513_v9 }
 0x26f   :  { %1435 = vmatprep.subr.bf16.mxu0 %v1514_v7 }
 0x270   :  { %1471 = vmatpush3.bf16.msra.mxu1 %v1514_v7 }
 0x271   :  { %1420 = vmatmul.mubr.bf16.gmra.mxu0 %v722_v4  ;;  %1464 = vmatprep.subr.bf16.mxu1 %v1515_v14 }
 0x272   :  { %1423 = vmatprep.mubr.bf16.mxu0 %v723_v8  ;;  %1436 = vmatpush3.bf16.msra.mxu0 %v1514_v7 }
 0x273   :  { %1437 = vmatprep.subr.bf16.mxu0 %v1515_v14 }
 0x274   :  { %1472 = vmatpush3.bf16.msra.mxu1 %v1515_v14 }
 0x275   :  { %1465 = vmatprep.subr.bf16.mxu1 %v1516_v22 }
 0x276   :  { %1438 = vmatpush3.bf16.msra.mxu0 %v1515_v14 }
 0x277   :  { %1439 = vmatprep.subr.bf16.mxu0 %v1516_v22 }
 0x278   :  { %1473 = vmatpush3.bf16.msra.mxu1 %v1516_v22 }
 0x279   :  { %1424 = vmatmul.mubr.bf16.gmra.mxu0 %v724_v48  ;;  %1466 = vmatprep.subr.bf16.mxu1 %v1517_v61 }
 0x27a   :  { %1440 = vmatpush3.bf16.msra.mxu0 %v1516_v22 }
 0x27b   :  { %1441 = vmatprep.subr.bf16.mxu0 %v1517_v61 }
 0x27c   :  { %1474 = vmatpush3.bf16.msra.mxu1 %v1517_v61 }
 0x27e   :  { %1442 = vmatpush3.bf16.msra.mxu0 %v1517_v61 }
 0x321   :  { %v1901_v31 = vpop.f32.mrf.mxu0 }
 0x322   :  { %v909_v26 = vmul.f32 %v1901_v31, %v1901_v31 }
 0x323   :  { %v1903_v21 = vpop.f32.mrf.mxu0 }
 0x324   :  { %v907_v30 = vmul.f32 %v1903_v21, %v1903_v21 }
 0x325   :  { %v1905_v19 = vpop.f32.mrf.mxu0 }
 0x326   :  { %v910_v43 = vmul.f32 %v1905_v19, %v1905_v19 }
 0x327   :  { %v1907_v10 = vpop.f32.mrf.mxu0 }
 0x328   :  { %v886_v11 = vadd.f32 %v1907_v10, %v1903_v21  ;;  %v908_v16 = vmul.f32 %v1907_v10, %v1907_v10 }
 0x329   :  { %v1915_v23 = vpop.f32.mrf.mxu0 }
 0x32a   :  { %v887_v20 = vadd.f32 %v1901_v31, %v886_v11  ;;  %v923_v12 = vadd.f32 %v908_v16, %v907_v30  ;;  %v913_v29 = vmul.f32 %v1915_v23, %v1915_v23 }
 0x32b   :  { %v1920_v39 = vpop.f32.mrf.mxu0 }
 0x32c   :  { %v924_v15 = vadd.f32 %v923_v12, %v909_v26  ;;  %v888_v27 = vadd.f32 %v1905_v19, %v887_v20  ;;  %v911_v17 = vmul.f32 %v1920_v39, %v1920_v39 }
 0x32d   :  { %v1925_v35 = vpop.f32.mrf.mxu0 }
 0x32e   :  { %v889_v52 = vadd.f32 %v888_v27, %v1920_v39  ;;  %v925_v18 = vadd.f32 %v924_v15, %v910_v43  ;;  %v914_v34 = vmul.f32 %v1925_v35, %v1925_v35 }
 0x32f   :  { %v1930_v47 = vpop.f32.mrf.mxu0 }
 0x330   :  { %v926_v24 = vadd.f32 %v925_v18, %v911_v17  ;;  %v890_v25 = vadd.f32 %v889_v52, %v1930_v47  ;;  %v912_v55 = vmul.f32 %v1930_v47, %v1930_v47 }
 0x331   :  { %v1935_v28 = vpop.f32.mrf.mxu0 }
 0x332   :  { %v891_v32 = vadd.f32 %v1915_v23, %v890_v25  ;;  %v927_v33 = vadd.f32 %v926_v24, %v912_v55  ;;  %v917_v0 = vmul.f32 %v1935_v28, %v1935_v28 }
 0x333   :  { %v1940_v36 = vpop.f32.mrf.mxu0 }
 0x334   :  { %v928_v37 = vadd.f32 %v927_v33, %v913_v29  ;;  %v892_v44 = vadd.f32 %v1925_v35, %v891_v32  ;;  %v915_v41 = vmul.f32 %v1940_v36, %v1940_v36  ;;  %v958_v33 = vsub.s32 4, %v1781_v45 }
 0x335   :  { %v1945_v38 = vpop.f32.mrf.mxu0 }
 0x336   :  { %v893_v40 = vadd.f32 %v892_v44, %v1940_v36  ;;  %v929_v42 = vadd.f32 %v928_v37, %v914_v34  ;;  %v918_v4 = vmul.f32 %v1945_v38, %v1945_v38 }
 0x337   :  { %v1950_v51 = vpop.f32.mrf.mxu0 }
 0x338   :  { %v930_v49 = vadd.f32 %v929_v42, %v915_v41  ;;  %v894_v50 = vadd.f32 %v893_v40, %v1950_v51  ;;  %v916_v54 = vmul.f32 %v1950_v51, %v1950_v51  ;;  %v978_v42 = vsub.s32 5, %v1781_v45 }
 0x339   :  { %v1955_v57 = vpop.f32.mrf.mxu0 }
 0x33a   :  { %v895_v59 = vadd.f32 %v1935_v28, %v894_v50  ;;  %v931_v60 = vadd.f32 %v930_v49, %v916_v54  ;;  %v921_v62 = vmul.f32 %v1955_v57, %v1955_v57 }
 0x33b   :  { %v871_v2 = vpop.f32.mrf.mxu0 }
 0x33c   :  { %v932_v5 = vadd.f32 %v931_v60, %v917_v0  ;;  %v896_v6 = vadd.f32 %v1945_v38, %v895_v59  ;;  %v919_v63 = vmul.f32 %v871_v2, %v871_v2 }
 0x33d   :  { %v1426_v1 = vpop.f32.mrf.mxu0 }
 0x33e   :  { %v897_v3 = vadd.f32 %v896_v6, %v871_v2  ;;  %v933_v48 = vadd.f32 %v932_v5, %v918_v4  ;;  %v922_v7 = vmul.f32 %v1426_v1, %v1426_v1 }
 0x33f   :  { %v874_v56 = vpop.f32.mrf.mxu0 }
 0x340   :  { %v934_v53 = vadd.f32 %v933_v48, %v919_v63  ;;  %v898_v8 = vadd.f32 %v897_v3, %v874_v56  ;;  %v920_v58 = vmul.f32 %v874_v56, %v874_v56 }
 0x342   :  { %v899_v13 = vadd.f32 %v1955_v57, %v898_v8  ;;  %v935_v9 = vadd.f32 %v934_v53, %v920_v58 }
 0x344   :  { %v900_v14 = vadd.f32 %v1426_v1, %v899_v13  ;;  %v936_v22 = vadd.f32 %v935_v9, %v921_v62 }
 0x346   :  { %v901_v61 = vrot.slane %v900_v14, 4  ;;  %v937_v30 = vadd.f32 %v936_v22, %v922_v7 }
 0x348   :  { %v902_v11 = vadd.f32 %v901_v61, %v900_v14  ;;  %v938_v16 = vrot.slane %v937_v30, 4 }
 0x34a   :  { %v903_v26 = vrot.slane %v902_v11, 2  ;;  %v939_v20 = vadd.f32 %v938_v16, %v937_v30 }
 0x34c   :  { %v904_v12 = vadd.f32 %v903_v26, %v902_v11  ;;  %v940_v43 = vrot.slane %v939_v20, 2 }
 0x34e   :  { %v905_v15 = vrot.slane %v904_v12, 1  ;;  %v941_v27 = vadd.f32 %v940_v43, %v939_v20 }
 0x350   :  { %v906_v52 = vadd.f32 %v905_v15, %v904_v12  ;;  %v942_v17 = vrot.slane %v941_v27, 1 }
 0x352   :  { %v943_v18 = vadd.f32 %v942_v17, %v941_v27  ;;  %v944_v24 = vmul.f32 0.0078125, %v906_v52 }
 0x354   :  { %v945_v25 = vmul.f32 0.0078125, %v943_v18  ;;  %v946_v55 = vmul.f32 %v944_v24, %v944_v24 }
 0x356   :  { %v947_v29 = vsub.f32 %v945_v25, %v946_v55 }
 0x358   :  { %v948_v32 = vadd.f32 1e-05, %v947_v29 }
 0x35a   :  { %1522 = vrsqrt.f32 %v948_v32 }
 0x367   :  { %v1523_v34 = vpop.eup %1522 }
 0x368   :  { %v950_v37 = vmul.f32 %v1523_v34, %v1786_v46 }
 0x36a   :  { %v951_v44 = vmul.f32 %v950_v37, %v944_v24  ;;  %v959_v40 = vrot.slane %v950_v37, %v958_v33 }
 0x36c   :  { %v953_v41 = vrot.slane %v951_v44, 7  ;;  %v973_v49 = vmul.f32 %v959_v40, %v874_v56  ;;  %v960_v54 = vmul.f32 %v959_v40, %v1903_v21  ;;  %v961_v0 = vmul.f32 %v959_v40, %v1907_v10 }
 0x36d   :  { %v964_v59 = vmul.f32 %v959_v40, %v1920_v39  ;;  %v965_v60 = vmul.f32 %v959_v40, %v1930_v47  ;;  %v962_v4 = vmul.f32 %v1901_v31, %v959_v40  ;;  %v963_v5 = vmul.f32 %v1905_v19, %v959_v40 }
 0x36e   :  { %v955_v50 = vsub.f32 %v1786_v46, %v953_v41  ;;  %v966_v6 = vmul.f32 %v1915_v23, %v959_v40  ;;  %v967_v63 = vmul.f32 %v1925_v35, %v959_v40  ;;  %v968_v48 = vmul.f32 %v959_v40, %v1940_v36 }
 0x36f   :  { %v969_v56 = vmul.f32 %v959_v40, %v1950_v51  ;;  %v970_v21 = vmul.f32 %v1935_v28, %v959_v40  ;;  %v971_v10 = vmul.f32 %v1945_v38, %v959_v40  ;;  %v972_v39 = vmul.f32 %v959_v40, %v871_v2 }
 0x370   :  { %v979_v3 = vrot.slane %v955_v50, %v978_v42  ;;  %v974_v47 = vmul.f32 %v1955_v57, %v959_v40  ;;  %v975_v19 = vmul.f32 %v1426_v1, %v959_v40 }
 0x372   :  { %v980_v53 = vadd.f32 %v979_v3, %v960_v54  ;;  %v981_v31 = vadd.f32 %v979_v3, %v961_v0  ;;  %v984_v8 = vadd.f32 %v979_v3, %v964_v59  ;;  %v985_v58 = vadd.f32 %v979_v3, %v965_v60 }
 0x373   :  { %v982_v23 = vadd.f32 %v979_v3, %v962_v4  ;;  %v983_v62 = vadd.f32 %v979_v3, %v963_v5  ;;  %v986_v13 = vadd.f32 %v979_v3, %v966_v6  ;;  %v993_v35 = vadd.f32 %v979_v3, %v973_v49 }
 0x374   :  { %v996_v9 = vmul.f32 0.01, %v980_v53  ;;  %v997_v36 = vmul.f32 0.01, %v981_v31  ;;  %v987_v7 = vadd.f32 %v979_v3, %v967_v63  ;;  %v1000_v51 = vmul.f32 0.01, %v984_v8 }
 0x375   :  { %v1001_v14 = vmul.f32 0.01, %v985_v58  ;;  %v998_v28 = vmul.f32 0.01, %v982_v23  ;;  %v988_v22 = vadd.f32 %v979_v3, %v968_v48  ;;  %v999_v61 = vmul.f32 0.01, %v983_v62 }
 0x376   :  { %v1012_v38 = vmax.f32 %v980_v53, %v996_v9  ;;  %v1013_v2 = vmax.f32 %v981_v31, %v997_v36  ;;  %v1002_v57 = vmul.f32 0.01, %v986_v13  ;;  %v1016_v30 = vmax.f32 %v984_v8, %v1000_v51 }
 0x377   :  { %v1017_v11 = vmax.f32 %v985_v58, %v1001_v14  ;;  %v1014_v16 = vmax.f32 %v982_v23, %v998_v28  ;;  %v1003_v1 = vmul.f32 0.01, %v987_v7  ;;  %v1015_v20 = vmax.f32 %v983_v62, %v999_v61 }
 0x378   :  { %v1028_v26 = vpack.c.bf16 %v1013_v2, %v1012_v38  ;;  %v1018_v12 = vmax.f32 %v986_v13, %v1002_v57  ;;  %v989_v43 = vadd.f32 %v979_v3, %v969_v56  ;;  %v1004_v52 = vmul.f32 0.01, %v988_v22 }
 0x379   :  { %v1030_v15 = vpack.c.bf16 %v1017_v11, %v1016_v30  ;;  %v1019_v27 = vmax.f32 %v987_v7, %v1003_v1  ;;  %v990_v17 = vadd.f32 %v979_v3, %v970_v21  ;;  %v1029_v18 = vpack.c.bf16 %v1015_v20, %v1014_v16 }
 0x37a   :  { %1443 = vmatprep.mubr.bf16.mxu0 %v1028_v26  ;;  %v1005_v24 = vmul.f32 0.01, %v989_v43  ;;  %v991_v25 = vadd.f32 %v979_v3, %v971_v10  ;;  %v992_v55 = vadd.f32 %v979_v3, %v972_v39  ;;  %v1009_v29 = vmul.f32 0.01, %v993_v35 }
 0x37b   :  { %1447 = vmatprep.mubr.bf16.mxu1 %v1030_v15  ;;  %v1031_v32 = vpack.c.bf16 %v1019_v27, %v1018_v12  ;;  %v1020_v33 = vmax.f32 %v988_v22, %v1004_v52  ;;  %v1006_v34 = vmul.f32 0.01, %v990_v17  ;;  %1444 = vmatmul.mubr.bf16.vlgmr.msra.gmra.mxu0 %v1029_v18  ;;  %v994_v41 = vadd.f32 %v979_v3, %v974_v47 }
 0x37c   :  { %v1021_v37 = vmax.f32 %v989_v43, %v1005_v24  ;;  %v1007_v44 = vmul.f32 0.01, %v991_v25  ;;  %v1008_v40 = vmul.f32 0.01, %v992_v55  ;;  %v995_v49 = vadd.f32 %v979_v3, %v975_v19 }
 0x37d   :  { %1448 = vmatmul.mubr.bf16.vlgmr.msra.gmra.mxu1 %v1031_v32  ;;  %v1022_v42 = vmax.f32 %v990_v17, %v1006_v34  ;;  %v1010_v0 = vmul.f32 0.01, %v994_v41  ;;  %v1025_v5 = vmax.f32 %v993_v35, %v1009_v29  ;;  %v1054_v21 = vsub.s32 6, %v1781_v45 }
 0x37e   :  { %v1032_v50 = vpack.c.bf16 %v1021_v37, %v1020_v33  ;;  %v1023_v54 = vmax.f32 %v991_v25, %v1007_v44  ;;  %v1011_v59 = vmul.f32 0.01, %v995_v49  ;;  %v1024_v4 = vmax.f32 %v992_v55, %v1008_v40 }
 0x37f   :  { %v1026_v6 = vmax.f32 %v994_v41, %v1010_v0  ;;  %v1055_v10 = vrot.slane %v1786_v46, %v1054_v21 }
 0x380   :  { %1451 = vmatprep.mubr.bf16.mxu1 %v1032_v50  ;;  %v1033_v60 = vpack.c.bf16 %v1023_v54, %v1022_v42  ;;  %v1027_v63 = vmax.f32 %v995_v49, %v1011_v59  ;;  %v1034_v56 = vpack.c.bf16 %v1025_v5, %v1024_v4 }
 0x382   :  { %v1035_v48 = vpack.c.bf16 %v1027_v63, %v1026_v6 }
 0x385   :  { %1452 = vmatmul.mubr.bf16.gmra.mxu1 %v1033_v60 }
 0x386   :  { %1455 = vmatprep.mubr.bf16.mxu1 %v1034_v56 }
 0x38d   :  { %1456 = vmatmul.mubr.bf16.gmra.mxu1 %v1035_v48 }
 0x43b   :  { %v1445_v3 = vpop.f32.mrf.mxu0 }
 0x43c   :  { %v1147_v39 = vadd.f32 %v1445_v3, %v1055_v10 }
 0x43d   :  { %v1449_v47 = vpop.f32.mrf.mxu1  ;;  %v1138_v31 = vpop.f32.mrf.mxu0 }
 0x43e   :  { %v1163_v53 = vadd.f32 %v1449_v47, %v1055_v10  ;;  %1203 = vst [vmem:[#allocation7 + $0x10] sm:$0xff] %v1147_v39  ;;  %v1139_v8 = vadd.f32 %v1138_v31, %v1055_v10 }
 0x43f   :  { %v1154_v19 = vpop.f32.mrf.mxu1  ;;  %v1446_v23 = vpop.f32.mrf.mxu0 }
 0x440   :  { %1207 = vst [vmem:[#allocation7 + $0x30] sm:$0xff] %v1163_v53  ;;  %v1155_v58 = vadd.f32 %v1154_v19, %v1055_v10  ;;  %1201 = vst [vmem:[#allocation7] sm:$0xff] %v1139_v8  ;;  %v1150_v62 = vadd.f32 %v1446_v23, %v1055_v10 }
 0x441   :  { %v1450_v13 = vpop.f32.mrf.mxu1  ;;  %v1141_v9 = vpop.f32.mrf.mxu0 }
 0x442   :  { %1205 = vst [vmem:[#allocation7 + $0x20] sm:$0xff] %v1155_v58  ;;  %v1166_v35 = vadd.f32 %v1450_v13, %v1055_v10  ;;  %1204 = vst [vmem:[#allocation7 + $0x18] sm:$0xff] %v1150_v62  ;;  %v1142_v45 = vadd.f32 %v1141_v9, %v1055_v10 }
 0x443   :  { %v1157_v46 = vpop.f32.mrf.mxu1 }
 0x444   :  { %1208 = vst [vmem:[#allocation7 + $0x38] sm:$0xff] %v1166_v35  ;;  %v1158_v36 = vadd.f32 %v1157_v46, %v1055_v10  ;;  %1202 = vst [vmem:[#allocation7 + $0x8] sm:$0xff] %v1142_v45 }
 0x445   :  { %v1453_v7 = vpop.f32.mrf.mxu1 }
 0x446   :  { %1206 = vst [vmem:[#allocation7 + $0x28] sm:$0xff] %v1158_v36  ;;  %v1179_v51 = vadd.f32 %v1453_v7, %v1055_v10 }
 0x447   :  { %v1170_v14 = vpop.f32.mrf.mxu1 }
 0x448   :  { %1211 = vst [vmem:[#allocation7 + $0x50] sm:$0xff] %v1179_v51  ;;  %v1171_v28 = vadd.f32 %v1170_v14, %v1055_v10 }
 0x449   :  { %v1454_v22 = vpop.f32.mrf.mxu1 }
 0x44a   :  { %1209 = vst [vmem:[#allocation7 + $0x40] sm:$0xff] %v1171_v28  ;;  %v1182_v38 = vadd.f32 %v1454_v22, %v1055_v10 }
 0x44b   :  { %v1173_v2 = vpop.f32.mrf.mxu1 }
 0x44c   :  { %1212 = vst [vmem:[#allocation7 + $0x58] sm:$0xff] %v1182_v38  ;;  %v1174_v61 = vadd.f32 %v1173_v2, %v1055_v10 }
 0x44d   :  { %v1457_v57 = vpop.f32.mrf.mxu1 }
 0x44e   :  { %1210 = vst [vmem:[#allocation7 + $0x48] sm:$0xff] %v1174_v61  ;;  %v1195_v30 = vadd.f32 %v1457_v57, %v1055_v10 }
 0x44f   :  { %v1186_v11 = vpop.f32.mrf.mxu1 }
 0x450   :  { %1215 = vst [vmem:[#allocation7 + $0x70] sm:$0xff] %v1195_v30  ;;  %v1187_v16 = vadd.f32 %v1186_v11, %v1055_v10 }
 0x451   :  { %v1458_v1 = vpop.f32.mrf.mxu1 }
 0x452   :  { %1213 = vst [vmem:[#allocation7 + $0x60] sm:$0xff] %v1187_v16  ;;  %v1198_v26 = vadd.f32 %v1458_v1, %v1055_v10 }
 0x453   :  { %v1189_v20 = vpop.f32.mrf.mxu1 }
 0x454   :  { %1216 = vst [vmem:[#allocation7 + $0x78] sm:$0xff] %v1198_v26  ;;  %v1190_v12 = vadd.f32 %v1189_v20, %v1055_v10 }
 0x456   :  { %1214 = vst [vmem:[#allocation7 + $0x68] sm:$0xff] %v1190_v12 }
 0x457   :  { %1575 = shalt.err (!%p1572_p0)
}
 0x458   :  { %s1595_s22 = smov 128   ;;  %s1596_s1 = smov 8  }
 0x459   :  { %1228 = dma.vmem_to_hbm [thread:$0]  %s1223_s20, 2048, %s1994_s6, [#allocation4], %s1595_s22, %s1595_s22, %s1596_s1  }
 0x45a   :  { %1588 = dma.done.wait [#allocation4], 2048  }
 0x45b   :  { %1589 = vsyncadd [#allocation4], 4294965248 }
 0x45c   :  { %1232 = vsyncpa [#allocation3], 1 }
 0x45d   :  { %1233 = vsyncpa [#allocation6], 1 }
 0x45e   :  { %1234 = vsyncpa [#allocation4], 1 }

</bundles_post_ra>
